<compile_context>
chip_gen: v6e
topology: v6e:2x2x1
jax: 0.10.0
libtpu: 0.0.40
codegen_flags: <defaults>
</compile_context>

<pallas_src>
import jax
import jax.numpy as jnp
from jax import lax
from jax.experimental import pallas as pl
from jax.experimental.pallas import tpu as pltpu

EPS = 1e-5
K = 5       # conv kernel size
PAD = 2     # conv padding
LANE = 128  # TPU lane width


def residual_block(x_ncl, w1, w2, g1, b1, g2, b2):
    """x_ncl: (N, C, L) like PyTorch.  w1, w2: (Cout, Cin, 5) like nn.Conv1d.weight."""
    N, C, L = x_ncl.shape
    LO = ((L + LANE - 1) // LANE) * LANE      # lane-dense working width (>= 128)
    LI = LO + 2 * PAD                         # input width incl. conv halo
    count = float(N * L)                      # BN normalizer (biased variance)
    f32 = jnp.float32

    # ---- glue (layout only): halo/lane zero-pad + flatten conv weights for im2col ----
    xin = jnp.pad(x_ncl.astype(f32), ((0, 0), (0, 0), (PAD, LI - L - PAD)))   # (N,C,LI)
    w1f = jnp.transpose(w1, (0, 2, 1)).reshape(C, K * C)                       # (Cout,K*Cin)
    w2f = jnp.transpose(w2, (0, 2, 1)).reshape(C, K * C)
    g1c, b1c = g1.reshape(C, 1).astype(f32), b1.reshape(C, 1).astype(f32)
    g2c, b2c = g2.reshape(C, 1).astype(f32), b2.reshape(C, 1).astype(f32)

    # ---------------- in-kernel helpers (closures over static shapes) ----------------
    def im2col(v):
        # v: (C, width >= LO+2*PAD). Tap k -> lanes [k, k+LO); stack taps on sublanes.
        return jnp.concatenate([v[:, k:k + LO] for k in range(K)], axis=0)   # (K*C, LO)

    def mask_valid(v):
        # zero out the lane-padding positions (l >= L) so they never pollute stats/conv2
        lane = lax.broadcasted_iota(jnp.int32, v.shape, 1)
        return jnp.where(lane < L, v, 0.0)

    def accum_stats(s_ref, y):
        ym = mask_valid(y)
        s_ref[...] += jnp.concatenate(
            [jnp.sum(ym, axis=-1, keepdims=True),
             jnp.sum(ym * ym, axis=-1, keepdims=True)], axis=-1)             # (C, 2)

    def bn_scale_shift(s_ref, g_ref, b_ref):
        # fold BN into one per-channel FMA: y*a + c
        mean = s_ref[:, 0:1] * (1.0 / count)
        var = s_ref[:, 1:2] * (1.0 / count) - mean * mean
        a = g_ref[...] * lax.rsqrt(var + EPS)                                # (C, 1)
        c = b_ref[...] - mean * a
        return a, c

    # ---------------- pass 1: conv1 (im2col matmul) + bn1 statistics ----------------
    def conv1_kernel(xin_ref, w1_ref, y1_ref, s1_ref):
        @pl.when(pl.program_id(0) == 0)
        def _():
            s1_ref[...] = jnp.zeros_like(s1_ref)
        x = xin_ref[0]                                                       # (C, LI)
        y = jnp.dot(w1_ref[...], im2col(x), preferred_element_type=f32)      # (C, LO)
        y1_ref[0] = y
        accum_stats(s1_ref, y)

    # ------- pass 2: bn1 apply (FMA) + tanh + conv2 (im2col matmul) + bn2 stats -------
    def bn1_conv2_kernel(y1_ref, s1_ref, g1_ref, b1_ref, w2_ref, y2_ref, s2_ref):
        @pl.when(pl.program_id(0) == 0)
        def _():
            s2_ref[...] = jnp.zeros_like(s2_ref)
        a, c = bn_scale_shift(s1_ref, g1_ref, b1_ref)
        h = mask_valid(jnp.tanh(y1_ref[0] * a + c))                          # (C, LO)
        # conv2 halo built in-register (no VMEM scratch round trip)
        zpad = jnp.zeros((C, PAD), f32)
        hp = jnp.concatenate([zpad, h, zpad], axis=-1)                       # (C, LO+4)
        y = jnp.dot(w2_ref[...], im2col(hp), preferred_element_type=f32)     # (C, LO)
        y2_ref[0] = y
        accum_stats(s2_ref, y)

    # ---------------- pass 3: bn2 apply + residual add + tanh ----------------
    def bn2_res_kernel(y2_ref, s2_ref, g2_ref, b2_ref, xin_ref, out_ref):
        a, c = bn_scale_shift(s2_ref, g2_ref, b2_ref)
        res = xin_ref[0][:, PAD:PAD + LO]                                    # identity residual
        out_ref[0] = jnp.tanh(y2_ref[0] * a + c + res).astype(out_ref.dtype)

    # ---------------- pallas_call plumbing ----------------
    vmem_limit = 32 * 1024 * 1024
    cp_acc = pltpu.CompilerParams(dimension_semantics=("arbitrary",),   # stats accumulate
                                  vmem_limit_bytes=vmem_limit)
    cp_par = pltpu.CompilerParams(dimension_semantics=("parallel",),
                                  vmem_limit_bytes=vmem_limit)

    blk_in = pl.BlockSpec((1, C, LI), lambda n: (n, 0, 0))
    blk_act = pl.BlockSpec((1, C, LO), lambda n: (n, 0, 0))
    blk_stat = pl.BlockSpec((C, 2), lambda n: (0, 0))
    blk_w = pl.BlockSpec((C, K * C), lambda n: (0, 0))
    blk_gb = pl.BlockSpec((C, 1), lambda n: (0, 0))

    y1, s1 = pl.pallas_call(
        conv1_kernel,
        grid=(N,),
        in_specs=[blk_in, blk_w],
        out_specs=(blk_act, blk_stat),
        out_shape=(jax.ShapeDtypeStruct((N, C, LO), f32),
                   jax.ShapeDtypeStruct((C, 2), f32)),
        compiler_params=cp_acc,
        cost_estimate=pl.CostEstimate(flops=2 * N * C * K * C * LO,
                                      transcendentals=0,
                                      bytes_accessed=4 * N * C * (LI + LO)),
    )(xin, w1f)

    y2, s2 = pl.pallas_call(
        bn1_conv2_kernel,
        grid=(N,),
        in_specs=[blk_act, blk_stat, blk_gb, blk_gb, blk_w],
        out_specs=(blk_act, blk_stat),
        out_shape=(jax.ShapeDtypeStruct((N, C, LO), f32),
                   jax.ShapeDtypeStruct((C, 2), f32)),
        compiler_params=cp_acc,
        cost_estimate=pl.CostEstimate(flops=2 * N * C * K * C * LO + 8 * N * C * LO,
                                      transcendentals=N * C * LO,
                                      bytes_accessed=4 * N * C * 2 * LO),
    )(y1, s1, g1c, b1c, w2f)

    out_pad = pl.pallas_call(
        bn2_res_kernel,
        grid=(N,),
        in_specs=[blk_act, blk_stat, blk_gb, blk_gb, blk_in],
        out_specs=blk_act,
        out_shape=jax.ShapeDtypeStruct((N, C, LO), x_ncl.dtype),
        compiler_params=cp_par,
        cost_estimate=pl.CostEstimate(flops=6 * N * C * LO,
                                      transcendentals=N * C * LO,
                                      bytes_accessed=4 * N * C * (LI + 2 * LO)),
    )(y2, s2, g2c, b2c, xin)

    return out_pad[:, :, :L]                                                 # (N, C, L)


def residual_block_ref(x, w1, w2, g1, b1, g2, b2):
    """Pure-JAX reference with identical semantics (NCL layout, training-mode BN)."""
    def conv(v, w):
        return lax.conv_general_dilated(v, w, window_strides=(1,), padding=[(PAD, PAD)],
                                        dimension_numbers=('NCH', 'OIH', 'NCH'))

    def bn(v, g, b):
        m = jnp.mean(v, axis=(0, 2), keepdims=True)
        va = jnp.mean((v - m) ** 2, axis=(0, 2), keepdims=True)
        return (v - m) * lax.rsqrt(va + EPS) * g[None, :, None] + b[None, :, None]

    out = jnp.tanh(bn(conv(x, w1), g1, b1))
    out = bn(conv(out, w2), g2, b2)
    return jnp.tanh(out + x)


if __name__ == "__main__":
    N, C, L = 2, 4, 16   # in_channels == out_channels, stride=1, downsample=None

    key = jax.random.PRNGKey(0)
    kx, kw1, kw2, kg1, kb1, kg2, kb2 = jax.random.split(key, 7)

    x = jax.random.normal(kx, (N, C, L), jnp.float32)
    w1 = jax.random.normal(kw1, (C, C, K), jnp.float32) * 0.1   # conv1.weight (Cout,Cin,K)
    w2 = jax.random.normal(kw2, (C, C, K), jnp.float32) * 0.1   # conv2.weight
    g1 = 1.0 + 0.1 * jax.random.normal(kg1, (C,), jnp.float32)  # bn1.weight
    b1 = 0.1 * jax.random.normal(kb1, (C,), jnp.float32)        # bn1.bias
    g2 = 1.0 + 0.1 * jax.random.normal(kg2, (C,), jnp.float32)  # bn2.weight
    b2 = 0.1 * jax.random.normal(kb2, (C,), jnp.float32)        # bn2.bias

    out = jax.jit(residual_block)(x, w1, w2, g1, b1, g2, b2)
    jax.block_until_ready(out)

    ref = residual_block_ref(x, w1, w2, g1, b1, g2, b2)
    assert out.shape == (N, C, L)
    assert jnp.allclose(out, ref, rtol=1e-3, atol=1e-3), "mismatch vs pure-JAX reference"

    print("KERNEL_OK")
</pallas_src>

<mosaic_0001>
module attributes {stable_mosaic.version = 11 : i64} {
  func.func @conv1_kernel(%arg0: i32, %arg1: memref<1x4x132xf32, #tpu.memory_space<vmem>>, %arg2: memref<4x20xf32, #tpu.memory_space<vmem>>, %arg3: memref<1x4x128xf32, #tpu.memory_space<vmem>>, %arg4: memref<4x2xf32, #tpu.memory_space<vmem>>) attributes {dimension_semantics = [#tpu.dimension_semantics<arbitrary>], iteration_bounds = array<i64: 2>, scalar_prefetch = 0 : i64, scratch_operands = 0 : i64, tpu.core_type = #tpu.core_type<tc>, window_params = [{transform_indices = @transform_0, window_bounds = array<i64: 1, 4, 132>}, {pipeline_mode = #tpu.pipeline_mode<synchronous>, transform_indices = @transform_1, window_bounds = array<i64: 4, 20>}, {transform_indices = @transform_2, window_bounds = array<i64: 1, 4, 128>}, {pipeline_mode = #tpu.pipeline_mode<synchronous>, transform_indices = @transform_3, window_bounds = array<i64: 4, 2>}]} {
    %c0_i32 = arith.constant 0 : i32
    %0 = arith.cmpi eq, %arg0, %c0_i32 : i32
    %1 = arith.extui %0 : i1 to i32
    %c0_i32_0 = arith.constant 0 : i32
    %2 = arith.cmpi ne, %1, %c0_i32_0 : i32
    scf.if %2 {
      %cst_15 = arith.constant 0.000000e+00 : f32
      %30 = vector.broadcast %cst_15 : f32 to vector<4x2xf32>
      %c0_16 = arith.constant 0 : index
      %c0_17 = arith.constant 0 : index
      %31 = vector.load %arg4[%c0_16, %c0_17] : memref<4x2xf32, #tpu.memory_space<vmem>>, vector<4x2xf32>
      tpu.vector_store %arg4[%c0_16, %c0_17], %30 {strides = array<i32>} : memref<4x2xf32, #tpu.memory_space<vmem>>, vector<4x2xf32>,
    } else {
    }
    %c0 = arith.constant 0 : index
    %c0_1 = arith.constant 0 : index
    %c0_2 = arith.constant 0 : index
    %3 = vector.load %arg1[%c0, %c0_1, %c0_2] : memref<1x4x132xf32, #tpu.memory_space<vmem>>, vector<1x4x132xf32>
    %4 = vector.shape_cast %3 : vector<1x4x132xf32> to vector<4x132xf32>
    %c0_3 = arith.constant 0 : index
    %c0_4 = arith.constant 0 : index
    %5 = vector.load %arg2[%c0_3, %c0_4] : memref<4x20xf32, #tpu.memory_space<vmem>>, vector<4x20xf32>
    %6 = vector.extract_strided_slice %4 {offsets = [0, 0], sizes = [4, 128], strides = [1, 1]} : vector<4x132xf32> to vector<4x128xf32>
    %7 = vector.extract_strided_slice %4 {offsets = [0, 1], sizes = [4, 128], strides = [1, 1]} : vector<4x132xf32> to vector<4x128xf32>
    %8 = vector.extract_strided_slice %4 {offsets = [0, 2], sizes = [4, 128], strides = [1, 1]} : vector<4x132xf32> to vector<4x128xf32>
    %9 = vector.extract_strided_slice %4 {offsets = [0, 3], sizes = [4, 128], strides = [1, 1]} : vector<4x132xf32> to vector<4x128xf32>
    %10 = vector.extract_strided_slice %4 {offsets = [0, 4], sizes = [4, 128], strides = [1, 1]} : vector<4x132xf32> to vector<4x128xf32>
    %11 = tpu.concatenate %6, %7, %8, %9, %10 in 0 : vector<4x128xf32>, vector<4x128xf32>, vector<4x128xf32>, vector<4x128xf32>, vector<4x128xf32> -> vector<20x128xf32>
    %cst = arith.constant dense<0.000000e+00> : vector<4x128xf32>
    %12 = tpu.matmul %5, %11, %cst {dimension_numbers = #tpu.dot_dimension_numbers<[1], [0], [0], [1], [0, 0, 1, 1], [], []>} : vector<4x20xf32>, vector<20x128xf32>, vector<4x128xf32> -> vector<4x128xf32>
    %c0_5 = arith.constant 0 : index
    %c0_6 = arith.constant 0 : index
    %c0_7 = arith.constant 0 : index
    %13 = vector.load %arg3[%c0_5, %c0_6, %c0_7] : memref<1x4x128xf32, #tpu.memory_space<vmem>>, vector<1x4x128xf32>
    %14 = vector.shape_cast %13 : vector<1x4x128xf32> to vector<4x128xf32>
    %15 = vector.shape_cast %12 : vector<4x128xf32> to vector<1x4x128xf32>
    tpu.vector_store %arg3[%c0_5, %c0_6, %c0_7], %15 {strides = array<i32>} : memref<1x4x128xf32, #tpu.memory_space<vmem>>, vector<1x4x128xf32>,
    %16 = tpu.iota {dimensions = array<i32: 1>} : vector<4x128xi32>
    %c16_i32 = arith.constant 16 : i32
    %17 = vector.broadcast %c16_i32 : i32 to vector<4x128xi32>
    %18 = arith.cmpi slt, %16, %17 : vector<4x128xi32>
    %cst_8 = arith.constant 0.000000e+00 : f32
    %19 = vector.broadcast %cst_8 : f32 to vector<4x128xf32>
    %20 = arith.select %18, %12, %19 : vector<4x128xi1>, vector<4x128xf32>
    %c0_9 = arith.constant 0 : index
    %c0_10 = arith.constant 0 : index
    %21 = vector.load %arg4[%c0_9, %c0_10] : memref<4x2xf32, #tpu.memory_space<vmem>>, vector<4x2xf32>
    %cst_11 = arith.constant dense<0.000000e+00> : vector<4xf32>
    %22 = vector.multi_reduction <add>, %20, %cst_11 [1] : vector<4x128xf32> to vector<4xf32>
    %23 = vector.shape_cast %22 : vector<4xf32> to vector<4x1xf32>
    %24 = arith.mulf %20, %20 : vector<4x128xf32>
    %cst_12 = arith.constant dense<0.000000e+00> : vector<4xf32>
    %25 = vector.multi_reduction <add>, %24, %cst_12 [1] : vector<4x128xf32> to vector<4xf32>
    %26 = vector.shape_cast %25 : vector<4xf32> to vector<4x1xf32>
    %27 = tpu.concatenate %23, %26 in 1 : vector<4x1xf32>, vector<4x1xf32> -> vector<4x2xf32>
    %28 = arith.addf %21, %27 : vector<4x2xf32>
    %c0_13 = arith.constant 0 : index
    %c0_14 = arith.constant 0 : index
    %29 = vector.load %arg4[%c0_13, %c0_14] : memref<4x2xf32, #tpu.memory_space<vmem>>, vector<4x2xf32>
    tpu.vector_store %arg4[%c0_13, %c0_14], %28 {strides = array<i32>} : memref<4x2xf32, #tpu.memory_space<vmem>>, vector<4x2xf32>,
    return
  }
  func.func @transform_0(%arg0: i32) -> (i32, i32, i32) {
    %c0_i32 = arith.constant 0 : i32
    %c0_i32_0 = arith.constant 0 : i32
    %c0_i32_1 = arith.constant 0 : i32
    return %arg0, %c0_i32, %c0_i32_0 : i32, i32, i32
  }
  func.func @transform_1(%arg0: i32) -> (i32, i32) {
    %c0_i32 = arith.constant 0 : i32
    %c0_i32_0 = arith.constant 0 : i32
    %c0_i32_1 = arith.constant 0 : i32
    return %c0_i32, %c0_i32_0 : i32, i32
  }
  func.func @transform_2(%arg0: i32) -> (i32, i32, i32) {
    %c0_i32 = arith.constant 0 : i32
    %c0_i32_0 = arith.constant 0 : i32
    %c0_i32_1 = arith.constant 0 : i32
    return %arg0, %c0_i32, %c0_i32_0 : i32, i32, i32
  }
  func.func @transform_3(%arg0: i32) -> (i32, i32) {
    %c0_i32 = arith.constant 0 : i32
    %c0_i32_0 = arith.constant 0 : i32
    %c0_i32_1 = arith.constant 0 : i32
    return %c0_i32, %c0_i32_0 : i32, i32
  }
}

module attributes {stable_mosaic.version = 11 : i64} {
  func.func @bn1_conv2_kernel(%arg0: i32, %arg1: memref<1x4x128xf32, #tpu.memory_space<vmem>>, %arg2: memref<4x2xf32, #tpu.memory_space<vmem>>, %arg3: memref<4x1xf32, #tpu.memory_space<vmem>>, %arg4: memref<4x1xf32, #tpu.memory_space<vmem>>, %arg5: memref<4x20xf32, #tpu.memory_space<vmem>>, %arg6: memref<1x4x128xf32, #tpu.memory_space<vmem>>, %arg7: memref<4x2xf32, #tpu.memory_space<vmem>>) attributes {dimension_semantics = [#tpu.dimension_semantics<arbitrary>], iteration_bounds = array<i64: 2>, scalar_prefetch = 0 : i64, scratch_operands = 0 : i64, tpu.core_type = #tpu.core_type<tc>, window_params = [{transform_indices = @transform_0, window_bounds = array<i64: 1, 4, 128>}, {pipeline_mode = #tpu.pipeline_mode<synchronous>, transform_indices = @transform_1, window_bounds = array<i64: 4, 2>}, {pipeline_mode = #tpu.pipeline_mode<synchronous>, transform_indices = @transform_2, window_bounds = array<i64: 4, 1>}, {pipeline_mode = #tpu.pipeline_mode<synchronous>, transform_indices = @transform_3, window_bounds = array<i64: 4, 1>}, {pipeline_mode = #tpu.pipeline_mode<synchronous>, transform_indices = @transform_4, window_bounds = array<i64: 4, 20>}, {transform_indices = @transform_5, window_bounds = array<i64: 1, 4, 128>}, {pipeline_mode = #tpu.pipeline_mode<synchronous>, transform_indices = @transform_6, window_bounds = array<i64: 4, 2>}]} {
    %c0_i32 = arith.constant 0 : i32
    %0 = arith.cmpi eq, %arg0, %c0_i32 : i32
    %1 = arith.extui %0 : i1 to i32
    %c0_i32_0 = arith.constant 0 : i32
    %2 = arith.cmpi ne, %1, %c0_i32_0 : i32
    scf.if %2 {
      %cst_28 = arith.constant 0.000000e+00 : f32
      %58 = vector.broadcast %cst_28 : f32 to vector<4x2xf32>
      %c0_29 = arith.constant 0 : index
      %c0_30 = arith.constant 0 : index
      %59 = vector.load %arg7[%c0_29, %c0_30] : memref<4x2xf32, #tpu.memory_space<vmem>>, vector<4x2xf32>
      tpu.vector_store %arg7[%c0_29, %c0_30], %58 {strides = array<i32>} : memref<4x2xf32, #tpu.memory_space<vmem>>, vector<4x2xf32>,
    } else {
    }
    %c0 = arith.constant 0 : index
    %c0_1 = arith.constant 0 : index
    %3 = vector.load %arg2[%c0, %c0_1] : memref<4x2xf32, #tpu.memory_space<vmem>>, vector<4x1xf32>
    %cst = arith.constant 3.125000e-02 : f32
    %4 = vector.broadcast %cst : f32 to vector<4x1xf32>
    %5 = arith.mulf %3, %4 : vector<4x1xf32>
    %c0_2 = arith.constant 0 : index
    %c1 = arith.constant 1 : index
    %6 = vector.load %arg2[%c0_2, %c1] : memref<4x2xf32, #tpu.memory_space<vmem>>, vector<4x1xf32>
    %cst_3 = arith.constant 3.125000e-02 : f32
    %7 = vector.broadcast %cst_3 : f32 to vector<4x1xf32>
    %8 = arith.mulf %6, %7 : vector<4x1xf32>
    %9 = arith.mulf %5, %5 : vector<4x1xf32>
    %10 = arith.subf %8, %9 : vector<4x1xf32>
    %c0_4 = arith.constant 0 : index
    %c0_5 = arith.constant 0 : index
    %11 = vector.load %arg3[%c0_4, %c0_5] : memref<4x1xf32, #tpu.memory_space<vmem>>, vector<4x1xf32>
    %cst_6 = arith.constant 9.99999974E-6 : f32
    %12 = vector.broadcast %cst_6 : f32 to vector<4x1xf32>
    %13 = arith.addf %10, %12 : vector<4x1xf32>
    %14 = math.rsqrt %13 : vector<4x1xf32>
    %15 = arith.mulf %11, %14 : vector<4x1xf32>
    %c0_7 = arith.constant 0 : index
    %c0_8 = arith.constant 0 : index
    %16 = vector.load %arg4[%c0_7, %c0_8] : memref<4x1xf32, #tpu.memory_space<vmem>>, vector<4x1xf32>
    %17 = arith.mulf %5, %15 : vector<4x1xf32>
    %18 = arith.subf %16, %17 : vector<4x1xf32>
    %c0_9 = arith.constant 0 : index
    %c0_10 = arith.constant 0 : index
    %c0_11 = arith.constant 0 : index
    %19 = vector.load %arg1[%c0_9, %c0_10, %c0_11] : memref<1x4x128xf32, #tpu.memory_space<vmem>>, vector<1x4x128xf32>
    %20 = vector.shape_cast %19 : vector<1x4x128xf32> to vector<4x128xf32>
    %21 = vector.broadcast %15 : vector<4x1xf32> to vector<4x128xf32>
    %22 = arith.mulf %20, %21 : vector<4x128xf32>
    %23 = vector.broadcast %18 : vector<4x1xf32> to vector<4x128xf32>
    %24 = arith.addf %22, %23 : vector<4x128xf32>
    %25 = math.tanh %24 : vector<4x128xf32>
    %26 = tpu.iota {dimensions = array<i32: 1>} : vector<4x128xi32>
    %c16_i32 = arith.constant 16 : i32
    %27 = vector.broadcast %c16_i32 : i32 to vector<4x128xi32>
    %28 = arith.cmpi slt, %26, %27 : vector<4x128xi32>
    %cst_12 = arith.constant 0.000000e+00 : f32
    %29 = vector.broadcast %cst_12 : f32 to vector<4x128xf32>
    %30 = arith.select %28, %25, %29 : vector<4x128xi1>, vector<4x128xf32>
    %cst_13 = arith.constant 0.000000e+00 : f32
    %31 = vector.broadcast %cst_13 : f32 to vector<4x2xf32>
    %32 = tpu.concatenate %31, %30, %31 in 1 : vector<4x2xf32>, vector<4x128xf32>, vector<4x2xf32> -> vector<4x132xf32>
    %c0_14 = arith.constant 0 : index
    %c0_15 = arith.constant 0 : index
    %33 = vector.load %arg5[%c0_14, %c0_15] : memref<4x20xf32, #tpu.memory_space<vmem>>, vector<4x20xf32>
    %34 = vector.extract_strided_slice %32 {offsets = [0, 0], sizes = [4, 128], strides = [1, 1]} : vector<4x132xf32> to vector<4x128xf32>
    %35 = vector.extract_strided_slice %32 {offsets = [0, 1], sizes = [4, 128], strides = [1, 1]} : vector<4x132xf32> to vector<4x128xf32>
    %36 = vector.extract_strided_slice %32 {offsets = [0, 2], sizes = [4, 128], strides = [1, 1]} : vector<4x132xf32> to vector<4x128xf32>
    %37 = vector.extract_strided_slice %32 {offsets = [0, 3], sizes = [4, 128], strides = [1, 1]} : vector<4x132xf32> to vector<4x128xf32>
    %38 = vector.extract_strided_slice %32 {offsets = [0, 4], sizes = [4, 128], strides = [1, 1]} : vector<4x132xf32> to vector<4x128xf32>
    %39 = tpu.concatenate %34, %35, %36, %37, %38 in 0 : vector<4x128xf32>, vector<4x128xf32>, vector<4x128xf32>, vector<4x128xf32>, vector<4x128xf32> -> vector<20x128xf32>
    %cst_16 = arith.constant dense<0.000000e+00> : vector<4x128xf32>
    %40 = tpu.matmul %33, %39, %cst_16 {dimension_numbers = #tpu.dot_dimension_numbers<[1], [0], [0], [1], [0, 0, 1, 1], [], []>} : vector<4x20xf32>, vector<20x128xf32>, vector<4x128xf32> -> vector<4x128xf32>
    %c0_17 = arith.constant 0 : index
    %c0_18 = arith.constant 0 : index
    %c0_19 = arith.constant 0 : index
    %41 = vector.load %arg6[%c0_17, %c0_18, %c0_19] : memref<1x4x128xf32, #tpu.memory_space<vmem>>, vector<1x4x128xf32>
    %42 = vector.shape_cast %41 : vector<1x4x128xf32> to vector<4x128xf32>
    %43 = vector.shape_cast %40 : vector<4x128xf32> to vector<1x4x128xf32>
    tpu.vector_store %arg6[%c0_17, %c0_18, %c0_19], %43 {strides = array<i32>} : memref<1x4x128xf32, #tpu.memory_space<vmem>>, vector<1x4x128xf32>,
    %44 = tpu.iota {dimensions = array<i32: 1>} : vector<4x128xi32>
    %c16_i32_20 = arith.constant 16 : i32
    %45 = vector.broadcast %c16_i32_20 : i32 to vector<4x128xi32>
    %46 = arith.cmpi slt, %44, %45 : vector<4x128xi32>
    %cst_21 = arith.constant 0.000000e+00 : f32
    %47 = vector.broadcast %cst_21 : f32 to vector<4x128xf32>
    %48 = arith.select %46, %40, %47 : vector<4x128xi1>, vector<4x128xf32>
    %c0_22 = arith.constant 0 : index
    %c0_23 = arith.constant 0 : index
    %49 = vector.load %arg7[%c0_22, %c0_23] : memref<4x2xf32, #tpu.memory_space<vmem>>, vector<4x2xf32>
    %cst_24 = arith.constant dense<0.000000e+00> : vector<4xf32>
    %50 = vector.multi_reduction <add>, %48, %cst_24 [1] : vector<4x128xf32> to vector<4xf32>
    %51 = vector.shape_cast %50 : vector<4xf32> to vector<4x1xf32>
    %52 = arith.mulf %48, %48 : vector<4x128xf32>
    %cst_25 = arith.constant dense<0.000000e+00> : vector<4xf32>
    %53 = vector.multi_reduction <add>, %52, %cst_25 [1] : vector<4x128xf32> to vector<4xf32>
    %54 = vector.shape_cast %53 : vector<4xf32> to vector<4x1xf32>
    %55 = tpu.concatenate %51, %54 in 1 : vector<4x1xf32>, vector<4x1xf32> -> vector<4x2xf32>
    %56 = arith.addf %49, %55 : vector<4x2xf32>
    %c0_26 = arith.constant 0 : index
    %c0_27 = arith.constant 0 : index
    %57 = vector.load %arg7[%c0_26, %c0_27] : memref<4x2xf32, #tpu.memory_space<vmem>>, vector<4x2xf32>
    tpu.vector_store %arg7[%c0_26, %c0_27], %56 {strides = array<i32>} : memref<4x2xf32, #tpu.memory_space<vmem>>, vector<4x2xf32>,
    return
  }
  func.func @transform_0(%arg0: i32) -> (i32, i32, i32) {
    %c0_i32 = arith.constant 0 : i32
    %c0_i32_0 = arith.constant 0 : i32
    %c0_i32_1 = arith.constant 0 : i32
    return %arg0, %c0_i32, %c0_i32_0 : i32, i32, i32
  }
  func.func @transform_1(%arg0: i32) -> (i32, i32) {
    %c0_i32 = arith.constant 0 : i32
    %c0_i32_0 = arith.constant 0 : i32
    %c0_i32_1 = arith.constant 0 : i32
    return %c0_i32, %c0_i32_0 : i32, i32
  }
  func.func @transform_2(%arg0: i32) -> (i32, i32) {
    %c0_i32 = arith.constant 0 : i32
    %c0_i32_0 = arith.constant 0 : i32
    %c0_i32_1 = arith.constant 0 : i32
    return %c0_i32, %c0_i32_0 : i32, i32
  }
  func.func @transform_3(%arg0: i32) -> (i32, i32) {
    %c0_i32 = arith.constant 0 : i32
    %c0_i32_0 = arith.constant 0 : i32
    %c0_i32_1 = arith.constant 0 : i32
    return %c0_i32, %c0_i32_0 : i32, i32
  }
  func.func @transform_4(%arg0: i32) -> (i32, i32) {
    %c0_i32 = arith.constant 0 : i32
    %c0_i32_0 = arith.constant 0 : i32
    %c0_i32_1 = arith.constant 0 : i32
    return %c0_i32, %c0_i32_0 : i32, i32
  }
  func.func @transform_5(%arg0: i32) -> (i32, i32, i32) {
    %c0_i32 = arith.constant 0 : i32
    %c0_i32_0 = arith.constant 0 : i32
    %c0_i32_1 = arith.constant 0 : i32
    return %arg0, %c0_i32, %c0_i32_0 : i32, i32, i32
  }
  func.func @transform_6(%arg0: i32) -> (i32, i32) {
    %c0_i32 = arith.constant 0 : i32
    %c0_i32_0 = arith.constant 0 : i32
    %c0_i32_1 = arith.constant 0 : i32
    return %c0_i32, %c0_i32_0 : i32, i32
  }
}

module attributes {stable_mosaic.version = 11 : i64} {
  func.func @bn2_res_kernel(%arg0: i32, %arg1: memref<1x4x128xf32, #tpu.memory_space<vmem>>, %arg2: memref<4x2xf32, #tpu.memory_space<vmem>>, %arg3: memref<4x1xf32, #tpu.memory_space<vmem>>, %arg4: memref<4x1xf32, #tpu.memory_space<vmem>>, %arg5: memref<1x4x132xf32, #tpu.memory_space<vmem>>, %arg6: memref<1x4x128xf32, #tpu.memory_space<vmem>>) attributes {dimension_semantics = [#tpu.dimension_semantics<parallel>], iteration_bounds = array<i64: 2>, scalar_prefetch = 0 : i64, scratch_operands = 0 : i64, tpu.core_type = #tpu.core_type<tc>, window_params = [{transform_indices = @transform_0, window_bounds = array<i64: 1, 4, 128>}, {pipeline_mode = #tpu.pipeline_mode<synchronous>, transform_indices = @transform_1, window_bounds = array<i64: 4, 2>}, {pipeline_mode = #tpu.pipeline_mode<synchronous>, transform_indices = @transform_2, window_bounds = array<i64: 4, 1>}, {pipeline_mode = #tpu.pipeline_mode<synchronous>, transform_indices = @transform_3, window_bounds = array<i64: 4, 1>}, {transform_indices = @transform_4, window_bounds = array<i64: 1, 4, 132>}, {transform_indices = @transform_5, window_bounds = array<i64: 1, 4, 128>}]} {
    %c0 = arith.constant 0 : index
    %c0_0 = arith.constant 0 : index
    %0 = vector.load %arg2[%c0, %c0_0] : memref<4x2xf32, #tpu.memory_space<vmem>>, vector<4x1xf32>
    %cst = arith.constant 3.125000e-02 : f32
    %1 = vector.broadcast %cst : f32 to vector<4x1xf32>
    %2 = arith.mulf %0, %1 : vector<4x1xf32>
    %c0_1 = arith.constant 0 : index
    %c1 = arith.constant 1 : index
    %3 = vector.load %arg2[%c0_1, %c1] : memref<4x2xf32, #tpu.memory_space<vmem>>, vector<4x1xf32>
    %cst_2 = arith.constant 3.125000e-02 : f32
    %4 = vector.broadcast %cst_2 : f32 to vector<4x1xf32>
    %5 = arith.mulf %3, %4 : vector<4x1xf32>
    %6 = arith.mulf %2, %2 : vector<4x1xf32>
    %7 = arith.subf %5, %6 : vector<4x1xf32>
    %c0_3 = arith.constant 0 : index
    %c0_4 = arith.constant 0 : index
    %8 = vector.load %arg3[%c0_3, %c0_4] : memref<4x1xf32, #tpu.memory_space<vmem>>, vector<4x1xf32>
    %cst_5 = arith.constant 9.99999974E-6 : f32
    %9 = vector.broadcast %cst_5 : f32 to vector<4x1xf32>
    %10 = arith.addf %7, %9 : vector<4x1xf32>
    %11 = math.rsqrt %10 : vector<4x1xf32>
    %12 = arith.mulf %8, %11 : vector<4x1xf32>
    %c0_6 = arith.constant 0 : index
    %c0_7 = arith.constant 0 : index
    %13 = vector.load %arg4[%c0_6, %c0_7] : memref<4x1xf32, #tpu.memory_space<vmem>>, vector<4x1xf32>
    %14 = arith.mulf %2, %12 : vector<4x1xf32>
    %15 = arith.subf %13, %14 : vector<4x1xf32>
    %c0_8 = arith.constant 0 : index
    %c0_9 = arith.constant 0 : index
    %c0_10 = arith.constant 0 : index
    %16 = vector.load %arg5[%c0_8, %c0_9, %c0_10] : memref<1x4x132xf32, #tpu.memory_space<vmem>>, vector<1x4x132xf32>
    %17 = vector.shape_cast %16 : vector<1x4x132xf32> to vector<4x132xf32>
    %18 = vector.extract_strided_slice %17 {offsets = [0, 2], sizes = [4, 128], strides = [1, 1]} : vector<4x132xf32> to vector<4x128xf32>
    %c0_11 = arith.constant 0 : index
    %c0_12 = arith.constant 0 : index
    %c0_13 = arith.constant 0 : index
    %19 = vector.load %arg1[%c0_11, %c0_12, %c0_13] : memref<1x4x128xf32, #tpu.memory_space<vmem>>, vector<1x4x128xf32>
    %20 = vector.shape_cast %19 : vector<1x4x128xf32> to vector<4x128xf32>
    %21 = vector.broadcast %12 : vector<4x1xf32> to vector<4x128xf32>
    %22 = arith.mulf %20, %21 : vector<4x128xf32>
    %23 = vector.broadcast %15 : vector<4x1xf32> to vector<4x128xf32>
    %24 = arith.addf %22, %23 : vector<4x128xf32>
    %25 = arith.addf %24, %18 : vector<4x128xf32>
    %26 = math.tanh %25 : vector<4x128xf32>
    %c0_14 = arith.constant 0 : index
    %c0_15 = arith.constant 0 : index
    %c0_16 = arith.constant 0 : index
    %27 = vector.load %arg6[%c0_14, %c0_15, %c0_16] : memref<1x4x128xf32, #tpu.memory_space<vmem>>, vector<1x4x128xf32>
    %28 = vector.shape_cast %27 : vector<1x4x128xf32> to vector<4x128xf32>
    %29 = vector.shape_cast %26 : vector<4x128xf32> to vector<1x4x128xf32>
    tpu.vector_store %arg6[%c0_14, %c0_15, %c0_16], %29 {strides = array<i32>} : memref<1x4x128xf32, #tpu.memory_space<vmem>>, vector<1x4x128xf32>,
    return
  }
  func.func @transform_0(%arg0: i32) -> (i32, i32, i32) {
    %c0_i32 = arith.constant 0 : i32
    %c0_i32_0 = arith.constant 0 : i32
    %c0_i32_1 = arith.constant 0 : i32
    return %arg0, %c0_i32, %c0_i32_0 : i32, i32, i32
  }
  func.func @transform_1(%arg0: i32) -> (i32, i32) {
    %c0_i32 = arith.constant 0 : i32
    %c0_i32_0 = arith.constant 0 : i32
    %c0_i32_1 = arith.constant 0 : i32
    return %c0_i32, %c0_i32_0 : i32, i32
  }
  func.func @transform_2(%arg0: i32) -> (i32, i32) {
    %c0_i32 = arith.constant 0 : i32
    %c0_i32_0 = arith.constant 0 : i32
    %c0_i32_1 = arith.constant 0 : i32
    return %c0_i32, %c0_i32_0 : i32, i32
  }
  func.func @transform_3(%arg0: i32) -> (i32, i32) {
    %c0_i32 = arith.constant 0 : i32
    %c0_i32_0 = arith.constant 0 : i32
    %c0_i32_1 = arith.constant 0 : i32
    return %c0_i32, %c0_i32_0 : i32, i32
  }
  func.func @transform_4(%arg0: i32) -> (i32, i32, i32) {
    %c0_i32 = arith.constant 0 : i32
    %c0_i32_0 = arith.constant 0 : i32
    %c0_i32_1 = arith.constant 0 : i32
    return %arg0, %c0_i32, %c0_i32_0 : i32, i32, i32
  }
  func.func @transform_5(%arg0: i32) -> (i32, i32, i32) {
    %c0_i32 = arith.constant 0 : i32
    %c0_i32_0 = arith.constant 0 : i32
    %c0_i32_1 = arith.constant 0 : i32
    return %arg0, %c0_i32, %c0_i32_0 : i32, i32, i32
  }
}

</mosaic_0001>

<bundles_post_ra>
// kernel: residual_block.3
= control target key start
LH: loop header
LB: loop body
LE: loop exit
PB: predicated region body
PF: predicated region fallthrough
CT: control target
= control target key end

     0   :  { %s440_s12 = smov 0   ;;  %s477_s0 = inlined_call_operand.vmem [shape: f32[2,4,132], index: 0, kind: input, shape index: {}]   ;;  %s478_s1 = inlined_call_operand.vmem [shape: f32[4,20], index: 1, kind: input, shape index: {}]   ;;  %s479_s2 = inlined_call_operand.vmem [shape: f32[2,4,128], index: 2, kind: output, shape index: {0}]   ;;  %s480_s3 = inlined_call_operand.vmem [shape: f32[4,2], index: 3, kind: output, shape index: {1}]  }
   0x1 LB: > { %s361_s13 = sadd.s32 4294967295, %s411_s12   ;;  %p365_p0 = scmp.ge.s32.totalorder %s411_s12, 1  ;;  %s411_s12 = sphi %s440_s12, %s14_s12  }
   0x2   : > { %p135_p1 = scmp.lt.s32.totalorder %s411_s12, 3 }
   0x4   : > { %p136_p2 = pnand %p365_p0, %p135_p1 }
   0x5   : > { %p158_p3 = scmp.lt.s32.totalorder (!%p136_p2), %s361_s13, 1  ;;  %p369_p4 = scmp.ne.s32.totalorder (!%p136_p2), %s361_s13, 0 }
   0x6   : > { %139 = sbr.rel (%p136_p2) target bundleno = 489 (0x1e9), region = 28 }
   0xb   : > { %s159_s14 = scalar_select %p158_p3, %s361_s13, 1 }
   0xc   : > { %170 = sbr.rel (%p369_p4) target bundleno = 19 (0x13), region = 32 }
   0xd   : > { %s374_s15 = sshll.u32 %s159_s14, 3  ;;  %s368_s16 = sshll.u32 %s159_s14, 2 }
   0xe   : > { %s162_s19 = scalar_lea.vmem %s477_s0, %s374_s15  ;;  %s454_s22 = scalar_lea.vmem %s479_s2, %s368_s16 }
  0x11   : > { %vm171_vm0 = vcmask 11264   ;;  %v413_v0 = vmov 0.0  }
  0x12   : > { %172 = vst.msk [vmem:[%s480_s3] sm:$0xf] %vm171_vm0, %v413_v0 }
  0x13 PF: > { %v173_v1 = vld [vmem:[%s162_s19] sm:$0xff]  ;;  %s414_s25 = smov 126   ;;  %s415_s26 = smov 124   ;;  %v416_v3 = vmov 0.0   ;;  %vm417_vm1 = vmmov 0   ;;  %vm203_vm2 = vcmask 1014784   ;;  %v285_v20 = vlaneseq }
  0x14   : > { %185 = vrot.lane.b32.xlu1 %v173_v1, %s414_s25  ;;  %199 = vrot.lane.b32.xlu0 %v173_v1, %s415_s26  ;;  %v184_v2 = vcombine.high %v173_v1, %v173_v1  ;;  %v176_v4 = vcombine.low %v173_v1, %v173_v1  ;;  %s418_s27 = smov 125   ;;  %s419_s28 = smov 127   ;;  %vm205_vm3 = vcmask 1043456   ;;  %vm189_vm4 = vcmask 1031168   ;;  %v174_v18 = vld [vmem:[%s478_s1] sm:$0xf] }
  0x15   : > { %379 = vmatprep.subr.mxu0 %v416_v3  ;;  %385 = vmatprep.mubr.msk.f32.mxu0 %vm417_vm1, %v416_v3  ;;  %vm196_vm5 = vcmask 1022976   ;;  %vm181_vm6 = vcmask 1039360   ;;  %vm208_vm7 = vcmask 162816   ;;  %v286_v21 = vand.u32 127, %v285_v20 }
  0x16   : > { %vm297_vm9 = vcmask 7168   ;;  %vm300_vm10 = vcmask 11264  }
  0x17   : > { %vm287_vm8 = vcmp.lt.s32.totalorder %v286_v21, 16 }
  0x18   : > { %187 = vrot.lane.b32.xlu1 %v184_v2, %s414_s25  ;;  %201 = vrot.lane.b32.xlu0 %v184_v2, %s415_s26 }
  0x19   : > { %v289_v28 = vld [vmem:[%s480_s3] sm:$0xf] }
  0x1c   : > { %194 = vrot.lane.b32.xlu1 %v173_v1, %s418_s27  ;;  %192 = vrot.lane.b32.xlu0 %v176_v4, %s418_s27 }
  0x20   : > { %179 = vrot.lane.b32.xlu1 %v173_v1, %s419_s28  ;;  %177 = vrot.lane.b32.xlu0 %v176_v4, %s419_s28 }
  0x86   : > { %v186_v5 = vpop.permute.xlu1 %185  ;;  %v200_v6 = vpop.permute.xlu0 %199 }
  0x8a   : > { %v188_v7 = vpop.permute.xlu1 %187  ;;  %v202_v8 = vpop.permute.xlu0 %201 }
  0x8b   : > { %v204_v9 = vsel %vm203_vm2, %v200_v6, %v202_v8  ;;  %v190_v12 = vsel %vm189_vm4, %v186_v5, %v188_v7 }
  0x8c   : > { %380 = vmatpush3.msk.msra.mxu0 %vm205_vm3, %v204_v9 }
  0x8d   : > { %381 = vmatprep.subr.mxu0 %v416_v3 }
  0x8e   : > { %v195_v10 = vpop.permute.xlu1 %194  ;;  %v193_v11 = vpop.permute.xlu0 %192 }
  0x8f   : > { %v197_v13 = vsel %vm196_vm5, %v193_v11, %v195_v10 }
  0x90   : > { %v207_v14 = vsel %vm205_vm3, %v190_v12, %v197_v13 }
  0x91   : > { %382 = vmatpush3.msra.mxu0 %v207_v14 }
  0x92   : > { %v180_v15 = vpop.permute.xlu1 %179  ;;  %v178_v16 = vpop.permute.xlu0 %177  ;;  %383 = vmatprep.subr.mxu0 %v416_v3 }
  0x93   : > { %v182_v17 = vsel %vm181_vm6, %v178_v16, %v180_v15 }
  0x94   : > { %v206_v19 = vsel %vm205_vm3, %v173_v1, %v182_v17 }
  0x95   : > { %384 = vmatpush3.msra.mxu0 %v206_v19 }
  0x96   : > { %386 = vmatmul.mubr.msk.f32.vlgmr.msra.gmra.mxu0 %vm208_vm7, %v174_v18 }
 0x156   : > { %v280_v22 = vpop.f32.mrf.mxu0 }
 0x157   : > { %284 = vst [vmem:[%s454_s22] sm:$0xf] %v280_v22  ;;  %v288_v23 = vsel %vm287_vm8, %v280_v22, 0.0 }
 0x158   : > { %v387_v24 = vpop.f32.mrf.mxu0  ;;  %v290_v25 = vsel %vm205_vm3, %v288_v23, 0.0  ;;  %v293_v26 = vmul.f32 %v288_v23, %v288_v23 }
 0x159   : > { %291 = vadd.xlane.f32.xlu0 %v290_v25 }
 0x15a   : > { %v294_v27 = vsel %vm205_vm3, %v293_v26, 0.0 }
 0x15b   : > { %295 = vadd.xlane.f32.xlu1 %v294_v27 }
 0x1e2   : > { %v292_v29 = vpop.xlane.xlu0 %291 }
 0x1e4   : > { %v296_v30 = vpop.xlane.xlu1 %295 }
 0x1e5   : > { %v298_v31 = vsel %vm297_vm9, %v292_v29, %v296_v30 }
 0x1e6   : > { %v299_v32 = vadd.f32 %v298_v31, %v289_v28 }
 0x1e8   : > { %301 = vst.msk [vmem:[%s480_s3] sm:$0xf] %vm300_vm10, %v299_v32 }
 0x1e9 PF: > { %s14_s12 = sadd.s32 1, %s411_s12  }
 0x1ea   : > { %p11_p5 = scmp.ge.s32.totalorder %s14_s12, 4  }
 0x1ec   :  { %13 = sbr.rel (!%p11_p5) target bundleno = 1 (0x1), region = 70 }

// kernel: residual_block.5
= control target key start
LH: loop header
LB: loop body
LE: loop exit
PB: predicated region body
PF: predicated region fallthrough
CT: control target
= control target key end

     0   :  { %10 = vsyncpa [#allocation3], 0  ;;  %s635_s0 = inlined_call_operand.vmem [shape: f32[2,4,128], index: 0, kind: input, shape index: {}]   ;;  %s636_s1 = inlined_call_operand.vmem [shape: f32[4,2], index: 1, kind: input, shape index: {}]   ;;  %s637_s2 = inlined_call_operand.vmem [shape: f32[4,1], index: 2, kind: input, shape index: {}]   ;;  %s638_s3 = inlined_call_operand.vmem [shape: f32[4,1], index: 3, kind: input, shape index: {}]   ;;  %s639_s4 = inlined_call_operand.vmem [shape: f32[2,4,132], index: 4, kind: input, shape index: {}]   ;;  %s640_s5 = inlined_call_operand.hbm [shape: f32[2,4,128], index: 5, kind: output, shape index: {}]  }
   0x1   :  { %12 = vsyncpa [#allocation3 + $0x1], 0  ;;  %s530_s18 = smov 0   ;;  %s532_s19 = smov 0  }
   0x2   :  { %s534_s20 = smov 0   ;;  %s536_s21 = smov 0  }
   0x3 LB: > { %s551_s22 = sadd.s32 4294967295, %s493_s21   ;;  %s370_s23 = sadd.s32 4294967294, %s493_s21   ;;  %s493_s21 = sphi %s536_s21, %s646_s21   ;;  %s489_s20 = sphi %s534_s20, %s645_s20   ;;  %s485_s19 = sphi %s532_s19, %s644_s19   ;;  %s481_s18 = sphi %s530_s18, %s643_s18  }
   0x4   : > { %s555_s24 = sadd.s32 1, %s493_s21   ;;  %s140_s25 = sadd.s32 1, %s489_s20 }
   0x5   : > { %s137_s26 = ssub.s32 %s493_s21, %s555_s24  ;;  %p150_p0 = scmp.ne.s32.totalorder %s489_s20, %s485_s19 }
   0x6   : > { %p138_p1 = scmp.eq.s32.totalorder %s137_s26, 0  ;;  %p151_p2 = scmp.eq.s32.totalorder %s551_s22, 1 }
   0x7   : > { %p156_p3 = scmp.ne.s32.totalorder %s485_s19, %s481_s18  ;;  %p157_p4 = scmp.eq.s32.totalorder %s370_s23, 1 }
   0x8   : > { %s566_s27 = scalar_select %p138_p1, %s489_s20, %s140_s25  }
   0x9   : > { %p568_p5 = por %p151_p2, %p150_p0  ;;  %p572_p6 = por %p157_p4, %p156_p3 }
   0xa   : > { %p373_p7 = scmp.ge.s32.totalorder %s493_s21, 1  ;;  %p199_p8 = scmp.lt.s32.totalorder %s493_s21, 3 }
   0xc   : > { %p200_p9 = pnand %p373_p7, %p199_p8 }
   0xd   : > { %s495_s7 = smov (!%p200_p9), 1   ;;  %p231_p10 = scmp.lt.s32.totalorder (!%p200_p9), %s551_s22, 1 }
   0xe   : > { %203 = sbr.rel (%p200_p9) target bundleno = 436 (0x1b4), region = 40  ;;  %s497_s10 = smov (!%p200_p9), 127  }
   0xf   : > { %s498_s14 = smov (!%p200_p9), 126   ;;  %s499_s17 = smov (!%p200_p9), [#allocation2]  }
  0x10   : > { %s437_s23 = sshll.u32 (!%p200_p9), %s499_s17, 4  ;;  %s438_s23 = int_to_ptr.vmem [resolvable:$false] %s437_s23 }
  0x13   : > { %v240_v0 = vld [vmem:[%s636_s1] sm:$0xf]  ;;  %v496_v6 = vmov 0   ;;  %s232_s8 = scalar_select %p231_p10, %s551_s22, 1  ;;  %vm279_vm0 = vcmask 1031168  }
  0x14   : > { %v241_v1 = vmul.f32 0.03125, %v240_v0  ;;  %426 = vset.pattern.permute.xlu1 %v496_v6  ;;  %427 = vset.pattern.permute.xlu0 %v496_v6  ;;  %v248_v9 = vld [vmem:[%s637_s2] sm:$0xf] }
  0x15   : > { %s382_s9 = sshll.u32 %s232_s8, 3  ;;  %v256_v12 = vld [vmem:[%s638_s3] sm:$0xf]  ;;  %s375_s25 = sshll.u32 %s232_s8, 2 }
  0x16   : > { %v242_v2 = vmul.f32 %v241_v1, %v241_v1  ;;  %s239_s13 = scalar_lea.vmem %s639_s4, %s382_s9  ;;  %s234_s6 = scalar_lea.vmem %s635_s0, %s375_s25 }
  0x17   : > { %v259_v8 = vld [vmem:[%s239_s13] sm:$0xff] }
  0x18   : > { %244 = vrot.lane.b32.xlu0 %v242_v2, %s495_s7  ;;  %v274_v15 = vcombine.high %v259_v8, %v259_v8  ;;  %v260_v17 = vld [vmem:[%s234_s6] sm:$0xf]  ;;  %s228_s7 = sand.u32 1, %s485_s19  }
  0x19   : > { %s374_s9 = sshll.u32 %s228_s7, 2  ;;  %s286_s15 = scalar_lea.sflag [#allocation3], %s228_s7 }
  0x1a   : > { %s230_s8 = scalar_lea.vmem [#allocation2], %s374_s9 }
  0x1b   : > { %s299_s11 = sshll.u32 %s230_s8, 4  ;;  %s300_s11 = int_to_ptr.vmem [resolvable:$true] %s299_s11 }
  0x1c   : > { %s433_s16 = scalar_lea.vmem %s300_s11, 64  ;;  %p440_p0 = scmp.lt.s32.totalorder %s300_s11, %s438_s23 }
  0x1d   : > { %p434_p11 = scmp.ne.s32.totalorder %s300_s11, %s433_s16 }
  0x1f   : > { %p435_p12 = pnand %p434_p11, %p568_p5 }
  0x21   : > { %p436_p13 = pneg %p435_p12 }
  0x8a   : > { %v245_v3 = vpop.permute.xlu0 %244 }
  0x8b   : > { %v247_v4 = vsub.f32 %v241_v1, %v245_v3 }
  0x8d   : > { %v249_v5 = vadd.f32 1e-05, %v247_v4 }
  0x8f   : > { %429 = vrsqrt.f32 %v249_v5 }
  0x9c   : > { %v430_v7 = vpop.eup %429 }
  0x9d   : > { %252 = vrot.lane.b32.xlu0 %v430_v7, %s497_s10  ;;  %s379_s10 = sshll.u32 %s551_s22, 6  ;;  %s439_s22 = scalar_lea.vmem %s438_s23, 128 }
  0x9e   : > { %p441_p1 = scmp.lt.s32.totalorder %s439_s22, %s433_s16 }
  0xa0   : > { %p442_p2 = por %p441_p1, %p440_p0 }
  0xa1   : > { %275 = vrot.lane.b32.xlu0 %v259_v8, %s498_s14 }
  0xa2   : > { %p443_p3 = pnand %p442_p2, %p436_p13 }
 0x10f   : > { %v253_v10 = vpop.permute.xlu0 %252 }
 0x110   : > { %v255_v11 = vmul.f32 %v253_v10, %v248_v9 }
 0x112   : > { %v257_v13 = vmul.f32 %v255_v11, %v241_v1  ;;  %263 = vperm.xlu1 %426, %v255_v11  }
 0x113   : > { %v276_v20 = vpop.permute.xlu0 %275 }
 0x114   : > { %v258_v14 = vsub.f32 %v256_v12, %v257_v13 }
 0x116   : > { %269 = vperm.xlu1 %426, %v258_v14  }
 0x11a   : > { %277 = vrot.lane.b32.xlu1 %v274_v15, %s498_s14  ;;  %s600_s14 = scalar_lea.hbm %s640_s5, %s379_s10 }
 0x18d   : > { %v264_v16 = vpop.permute.xlu1 %263 }
 0x18e   : > { %v266_v19 = vmul.f32 %v264_v16, %v260_v17 }
 0x191   : > { %v270_v18 = vpop.permute.xlu1 %269 }
 0x192   : > { %v272_v21 = vadd.f32 %v270_v18, %v266_v19 }
 0x195   : > { %v278_v22 = vpop.permute.xlu1 %277 }
 0x196   : > { %v280_v23 = vsel %vm279_vm0, %v276_v20, %v278_v22 }
 0x197   : > { %v282_v24 = vadd.f32 %v280_v23, %v272_v21 }
 0x199   : > { %431 = vtanh.f32 %v282_v24 }
 0x1a6   : > { %v432_v25 = vpop.eup %431 }
 0x1a7   : > { %284 = vst [vmem:[%s230_s8] sm:$0xf] %v432_v25 }
 0x1a8   : > { %446 = shalt.err (!%p443_p3)
}
 0x1a9   : > { %s447_s25 = scalar_lea.hbm %s600_s14, 64  ;;  %s451_s6 = scalar_lea.hbm %s640_s5, 128 }
 0x1aa   : > { %p448_p4 = scmp.ne.s32.totalorder %s600_s14, %s447_s25  ;;  %p452_p9 = scmp.lt.s32.totalorder %s600_s14, %s640_s5 }
 0x1ab   : > { %p453_p10 = scmp.lt.s32.totalorder %s451_s6, %s447_s25 }
 0x1ac   : > { %p449_p7 = pnand %p448_p4, %p568_p5 }
 0x1ad   : > { %p454_p11 = por %p453_p10, %p452_p9 }
 0x1ae   : > { %p450_p8 = pneg %p449_p7 }
 0x1b0   : > { %p455_p12 = pnand %p454_p11, %p450_p8 }
 0x1b2   : > { %458 = shalt.err (!%p455_p12)
}
 0x1b3   : > { %383 = dma.vmem_to_hbm [thread:$0]  (%p568_p5), %s300_s11, 64, %s600_s14, %s286_s15  }
 0x1b4 PF: > { %p389_p13 = scmp.ge.s32.totalorder %s493_s21, 2  ;;  %s311_s10 = sand.u32 1, %s481_s18  }
 0x1b5   : > { %s312_s8 = scalar_lea.sflag [#allocation3], %s311_s10 }
 0x1b6   : > { %p386_p0 = pnand %p389_p13, %p572_p6 }
 0x1b8   : > { %p387_p1 = pneg %p386_p0 }
 0x1ba   : > { %476 = dma.done.wait (%p387_p1), %s312_s8, 64  }
 0x1bb   : > { %478 = vsyncadd (%p387_p1), %s312_s8, 4294967232  ;;  %p15_p2 = scmp.ge.s32.totalorder %s555_s24, 4   ;;  %s643_s18 = smov %s485_s19 }
 0x1bc   : > { %s644_s19 = smov %s489_s20  ;;  %s645_s20 = smov %s566_s27 }
 0x1bd   : > { %s646_s21 = smov %s555_s24  ;;  %17 = sbr.rel (!%p15_p2) target bundleno = 3 (0x3), region = 78 }
 0x1c2   :  { %317 = vsyncpa [#allocation3], 1 }
 0x1c3   :  { %319 = vsyncpa [#allocation3 + $0x1], 1 }

// kernel: residual_block.4
= control target key start
LH: loop header
LB: loop body
LE: loop exit
PB: predicated region body
PF: predicated region fallthrough
CT: control target
= control target key end

     0   :  { %s582_s21 = smov 0   ;;  %s636_s0 = inlined_call_operand.vmem [shape: f32[2,4,128], index: 0, kind: input, shape index: {}]   ;;  %s637_s1 = inlined_call_operand.vmem [shape: f32[4,2], index: 1, kind: input, shape index: {}]   ;;  %s638_s2 = inlined_call_operand.vmem [shape: f32[4,1], index: 2, kind: input, shape index: {}]   ;;  %s639_s3 = inlined_call_operand.vmem [shape: f32[4,1], index: 3, kind: input, shape index: {}]   ;;  %s640_s4 = inlined_call_operand.vmem [shape: f32[4,20], index: 4, kind: input, shape index: {}]   ;;  %s641_s5 = inlined_call_operand.vmem [shape: f32[2,4,128], index: 5, kind: output, shape index: {0}]   ;;  %s642_s6 = inlined_call_operand.vmem [shape: f32[4,2], index: 6, kind: output, shape index: {1}]  }
   0x1 LB: > { %s480_s22 = sadd.s32 4294967295, %s535_s21   ;;  %p484_p0 = scmp.ge.s32.totalorder %s535_s21, 1  ;;  %s535_s21 = sphi %s582_s21, %s17_s21  }
   0x2   : > { %p209_p1 = scmp.lt.s32.totalorder %s535_s21, 3 }
   0x4   : > { %p210_p2 = pnand %p484_p0, %p209_p1 }
   0x5   : > { %p237_p3 = scmp.lt.s32.totalorder (!%p210_p2), %s480_s22, 1  ;;  %p487_p4 = scmp.ne.s32.totalorder (!%p210_p2), %s480_s22, 0 }
   0x6   : > { %213 = sbr.rel (%p210_p2) target bundleno = 1004 (0x3ec), region = 40 }
   0xb   : > { %s238_s23 = scalar_select %p237_p3, %s480_s22, 1 }
   0xc   : > { %248 = sbr.rel (%p487_p4) target bundleno = 19 (0x13), region = 44 }
   0xd   : > { %s485_s24 = sshll.u32 %s238_s23, 2 }
   0xe   : > { %s593_s27 = scalar_lea.vmem %s636_s0, %s485_s24  ;;  %s598_s30 = scalar_lea.vmem %s641_s5, %s485_s24 }
  0x11   : > { %vm249_vm0 = vcmask 11264   ;;  %v537_v0 = vmov 0.0  }
  0x12   : > { %250 = vst.msk [vmem:[%s642_s6] sm:$0xf] %vm249_vm0, %v537_v0 }
  0x13 PF: > { %v251_v1 = vld [vmem:[%s637_s1] sm:$0xf]  ;;  %s538_s11 = smov 1   ;;  %v539_v7 = vmov 0   ;;  %s540_s12 = smov 127   ;;  %v284_v20 = vlaneseq  ;;  %v542_v24 = vmov 0.0  }
  0x14   : > { %v252_v2 = vmul.f32 0.03125, %v251_v1  ;;  %523 = vset.pattern.permute.xlu1 %v539_v7  ;;  %524 = vset.pattern.permute.xlu0 %v539_v7  ;;  %v259_v9 = vld [vmem:[%s638_s2] sm:$0xf]  ;;  %s541_s17 = smov 2   ;;  %vm292_vm2 = vcmask 15360   ;;  %s543_s18 = smov 124  }
  0x15   : > { %v267_v12 = vld [vmem:[%s639_s3] sm:$0xf]  ;;  %v285_v21 = vand.u32 127, %v284_v20  ;;  %496 = vmatprep.subr.mxu0 %v542_v24  ;;  %vm544_vm3 = vmmov 0   ;;  %s545_s19 = smov 126   ;;  %s546_s20 = smov 125  }
  0x16   : > { %v253_v3 = vmul.f32 %v252_v2, %v252_v2  ;;  %v270_v15 = vld [vmem:[%s593_s27] sm:$0xf]  ;;  %502 = vmatprep.mubr.msk.f32.mxu0 %vm544_vm3, %v542_v24  ;;  %vm325_vm4 = vcmask 1014784   ;;  %vm327_vm5 = vcmask 1043456   ;;  %vm311_vm6 = vcmask 1031168  }
  0x17   : > { %vm286_vm1 = vcmp.lt.s32.totalorder %v285_v21, 16  ;;  %vm318_vm7 = vcmask 1022976   ;;  %vm304_vm8 = vcmask 1039360   ;;  %v295_v43 = vld [vmem:[%s640_s4] sm:$0xf]  ;;  %vm330_vm9 = vcmask 162816  }
  0x18   : > { %255 = vrot.lane.b32.xlu0 %v253_v3, %s538_s11  ;;  %vm416_vm10 = vcmask 7168   ;;  %vm419_vm11 = vcmask 11264  }
  0x19   : > { %v408_v51 = vld [vmem:[%s642_s6] sm:$0xf] }
  0x8a   : > { %v256_v4 = vpop.permute.xlu0 %255 }
  0x8b   : > { %v258_v5 = vsub.f32 %v252_v2, %v256_v4 }
  0x8d   : > { %v260_v6 = vadd.f32 1e-05, %v258_v5 }
  0x8f   : > { %525 = vrsqrt.f32 %v260_v6 }
  0x9c   : > { %v526_v8 = vpop.eup %525 }
  0x9d   : > { %263 = vrot.lane.b32.xlu0 %v526_v8, %s540_s12 }
 0x10f   : > { %v264_v10 = vpop.permute.xlu0 %263 }
 0x110   : > { %v266_v11 = vmul.f32 %v264_v10, %v259_v9 }
 0x112   : > { %v268_v13 = vmul.f32 %v266_v11, %v252_v2  ;;  %273 = vperm.xlu1 %523, %v266_v11  }
 0x114   : > { %v269_v14 = vsub.f32 %v267_v12, %v268_v13 }
 0x116   : > { %279 = vperm.xlu1 %523, %v269_v14  }
 0x18d   : > { %v274_v16 = vpop.permute.xlu1 %273 }
 0x18e   : > { %v276_v17 = vmul.f32 %v274_v16, %v270_v15 }
 0x191   : > { %v280_v18 = vpop.permute.xlu1 %279 }
 0x192   : > { %v282_v19 = vadd.f32 %v280_v18, %v276_v17 }
 0x194   : > { %527 = vtanh.f32 %v282_v19 }
 0x1a1   : > { %v528_v22 = vpop.eup %527 }
 0x1a2   : > { %v287_v23 = vsel %vm286_vm1, %v528_v22, 0.0 }
 0x1a3   : > { %289 = vrot.lane.b32.xlu0 %v287_v23, %s541_s17 }
 0x215   : > { %v290_v25 = vpop.permute.xlu0 %289 }
 0x216   : > { %v293_v26 = vsel %vm292_vm2, 0.0, %v290_v25  ;;  %v294_v27 = vsel %vm292_vm2, %v290_v25, 0.0 }
 0x217   : > { %323 = vrot.lane.b32.xlu0 %v294_v27, %s543_s18  ;;  %321 = vrot.lane.b32.xlu1 %v293_v26, %s543_s18  ;;  %v299_v28 = vrot.slane %v294_v27, 4  ;;  %v298_v29 = vrot.slane %v293_v26, 4 }
 0x21b   : > { %309 = vrot.lane.b32.xlu0 %v294_v27, %s545_s19  ;;  %307 = vrot.lane.b32.xlu1 %v293_v26, %s545_s19 }
 0x21f   : > { %316 = vrot.lane.b32.xlu0 %v299_v28, %s546_s20  ;;  %314 = vrot.lane.b32.xlu1 %v298_v29, %s546_s20 }
 0x223   : > { %302 = vrot.lane.b32.xlu0 %v299_v28, %s540_s12  ;;  %300 = vrot.lane.b32.xlu1 %v298_v29, %s540_s12 }
 0x289   : > { %v324_v30 = vpop.permute.xlu0 %323  ;;  %v322_v31 = vpop.permute.xlu1 %321 }
 0x28a   : > { %v326_v32 = vsel %vm325_vm4, %v322_v31, %v324_v30 }
 0x28b   : > { %497 = vmatpush3.msk.msra.mxu0 %vm327_vm5, %v326_v32 }
 0x28c   : > { %498 = vmatprep.subr.mxu0 %v542_v24 }
 0x28d   : > { %v310_v33 = vpop.permute.xlu0 %309  ;;  %v308_v34 = vpop.permute.xlu1 %307 }
 0x28e   : > { %v312_v37 = vsel %vm311_vm6, %v308_v34, %v310_v33 }
 0x291   : > { %v317_v35 = vpop.permute.xlu0 %316  ;;  %v315_v36 = vpop.permute.xlu1 %314 }
 0x292   : > { %v319_v38 = vsel %vm318_vm7, %v315_v36, %v317_v35 }
 0x293   : > { %v329_v39 = vsel %vm327_vm5, %v312_v37, %v319_v38 }
 0x294   : > { %499 = vmatpush3.msra.mxu0 %v329_v39 }
 0x295   : > { %v303_v40 = vpop.permute.xlu0 %302  ;;  %v301_v41 = vpop.permute.xlu1 %300  ;;  %500 = vmatprep.subr.mxu0 %v542_v24 }
 0x296   : > { %v305_v42 = vsel %vm304_vm8, %v301_v41, %v303_v40 }
 0x297   : > { %v328_v44 = vsel %vm327_vm5, %v293_v26, %v305_v42 }
 0x298   : > { %501 = vmatpush3.msra.mxu0 %v328_v44 }
 0x299   : > { %503 = vmatmul.mubr.msk.f32.vlgmr.msra.gmra.mxu0 %vm330_vm9, %v295_v43 }
 0x359   : > { %v402_v45 = vpop.f32.mrf.mxu0 }
 0x35a   : > { %406 = vst [vmem:[%s598_s30] sm:$0xf] %v402_v45  ;;  %v407_v46 = vsel %vm286_vm1, %v402_v45, 0.0 }
 0x35b   : > { %v504_v47 = vpop.f32.mrf.mxu0  ;;  %v409_v48 = vsel %vm327_vm5, %v407_v46, 0.0  ;;  %v412_v49 = vmul.f32 %v407_v46, %v407_v46 }
 0x35c   : > { %410 = vadd.xlane.f32.xlu1 %v409_v48 }
 0x35d   : > { %v413_v50 = vsel %vm327_vm5, %v412_v49, 0.0 }
 0x35e   : > { %414 = vadd.xlane.f32.xlu0 %v413_v50 }
 0x3e5   : > { %v411_v52 = vpop.xlane.xlu1 %410 }
 0x3e7   : > { %v415_v53 = vpop.xlane.xlu0 %414 }
 0x3e8   : > { %v417_v54 = vsel %vm416_vm10, %v411_v52, %v415_v53 }
 0x3e9   : > { %v418_v55 = vadd.f32 %v417_v54, %v408_v51 }
 0x3eb   : > { %420 = vst.msk [vmem:[%s642_s6] sm:$0xf] %vm419_vm11, %v418_v55 }
 0x3ec PF: > { %s17_s21 = sadd.s32 1, %s535_s21  }
 0x3ed   : > { %p14_p5 = scmp.ge.s32.totalorder %s17_s21, 4  }
 0x3ef   :  { %16 = sbr.rel (!%p14_p5) target bundleno = 1 (0x1), region = 82 }

</bundles_post_ra>
